<compile_context>
chip_gen: v7x
topology: tpu7x:2x2x1
jax: 0.10.0
libtpu: 0.0.40
codegen_flags: <defaults>
</compile_context>

<pallas_src>
import functools

import jax
import jax.numpy as jnp
from jax.experimental import pallas as pl
from jax.experimental.pallas import tpu as pltpu

# ---- "config" (cfg.get defaults are 0 => identity; pick non-trivial values
#      scaled to the small demo size so the kernel actually masks something).
CUTOUT_X_REGIONS = 1   # number of freq bands per batch element
CUTOUT_X_WIDTH   = 2   #   freq band width
CUTOUT_Y_REGIONS = 1   # number of time bands per batch element
CUTOUT_Y_WIDTH   = 8   #   time band width


def _spec_augment_kernel(band_f_ref, band_t_ref, x_hbm, o_hbm,
                         zeros_f, twin, sem_f, sem_t,
                         *, n_x, w_x, n_y, w_y, T, TW, aligned):
    """One batch element per grid step; writes only the masked bands.

    band_f_ref : SMEM (B*n_x,) int32 -- freq-band starts (mask[b, fs:fs+w_x, :]=1)
    band_t_ref : SMEM (B*n_y,) int32 -- time-band starts (mask[b, :, ts:ts+w_y]=1)
    x_hbm/o_hbm: HBM (B, F, T) refs; o_hbm is aliased to x_hbm (in-place).
    zeros_f    : VMEM (w_x, T)  zero tile, DMA source for the freq bands.
    twin       : VMEM (F, TW)   window buffer for time-band read-modify-write.
    """
    b = pl.program_id(0)
    F = twin.shape[0]
    dtype = twin.dtype

    # Re-zero the freq-band DMA source every step so the kernel stays correct
    # when the (parallel) batch axis is split across TensorCores.
    if n_x:
        zeros_f[...] = jnp.zeros_like(zeros_f)

    # 1) Kick off the freq-band zero writes:  o[b, fs:fs+w_x, :] = 0
    freq_copies = []
    for r in range(n_x):
        fs = band_f_ref[b * n_x + r]
        cp = pltpu.make_async_copy(
            zeros_f, o_hbm.at[b, pl.ds(fs, w_x), :], sem_f.at[r])
        cp.start()
        freq_copies.append(cp)

    # 2) Time bands: read-modify-write a small lane window around each band.
    if n_y:
        # Freq-row keep mask (also applied inside the window so the region
        # where the freq DMA and the window write-back overlap is written with
        # the same value -- zero -- by both, making the ordering irrelevant).
        f_iota = jax.lax.broadcasted_iota(jnp.int32, (F, 1), 0)
        f_keep = jnp.ones((F, 1), dtype=dtype)
        for r in range(n_x):
            fs = band_f_ref[b * n_x + r]
            hit = (f_iota >= fs) & (f_iota < fs + w_x)
            f_keep = f_keep * (1 - hit.astype(dtype))

        t_iota = jax.lax.broadcasted_iota(jnp.int32, (1, TW), 1)

        for r in range(n_y):
            ts = band_t_ref[b * n_y + r]
            if aligned:
                # 128-aligned window start covering [ts, ts + w_y).
                t0 = jnp.minimum((ts // 128) * 128, T - TW)
                t0 = pl.multiple_of(t0, 128)
                src = x_hbm.at[b, :, pl.ds(t0, TW)]
                dst = o_hbm.at[b, :, pl.ds(t0, TW)]
            else:
                t0 = 0          # TW == T: full-row window, static offset
                src = x_hbm.at[b]
                dst = o_hbm.at[b]

            rd = pltpu.make_async_copy(src, twin, sem_t.at[0])
            rd.start()
            rd.wait()

            col = t_iota + t0
            t_keep = 1 - ((col >= ts) & (col < ts + w_y)).astype(dtype)
            # Separable multiplicative masks in the data dtype (masked_fill(0)).
            twin[...] = twin[...] * t_keep * f_keep

            wr = pltpu.make_async_copy(twin, dst, sem_t.at[1])
            wr.start()
            wr.wait()           # serialize regions: later reads see the zeros

    # 3) Drain the freq-band DMAs.
    for cp in freq_copies:
        cp.wait()


@functools.partial(jax.jit, donate_argnums=(0,))
def spec_augment(x, band_f, band_t):
    """x: (B, F, T) float (DONATED -- updated in place).
    band_f: (B, n_x) int, band_t: (B, n_y) int band starts."""
    B, F, T = x.shape
    assert jnp.issubdtype(x.dtype, jnp.floating), "expects a float spectrogram"
    n_x, w_x = CUTOUT_X_REGIONS, CUTOUT_X_WIDTH
    n_y, w_y = CUTOUT_Y_REGIONS, CUTOUT_Y_WIDTH
    if n_x:
        assert w_x <= F
    if n_y:
        assert w_y <= T

    # Time-band window: smallest 128-lane multiple that can cover a w_y-wide
    # band starting anywhere, when anchored at a 128-aligned start.  Fall back
    # to a full-row window when T is unaligned or too short.
    tw_needed = ((w_y + 127 + 127) // 128) * 128      # >= w_y + 127
    if T % 128 == 0 and tw_needed < T:
        TW, aligned = tw_needed, True
    else:
        TW, aligned = T, False
        # TODO(synk): for long, non-128-multiple T an element-granular DMA
        # offset (or an unaligned tail window) would keep the time-band
        # traffic O(F * w_y) instead of O(F * T).

    # Flatten band tables to 1-D int32 (cheap SMEM padding) and clamp starts to
    # the valid range (same range PyTorch's random.uniform(0, dim - width)
    # guarantees) so the in-place DMAs can never write out of bounds.
    band_f = jnp.clip(band_f.reshape(-1).astype(jnp.int32), 0, max(F - w_x, 0))
    band_t = jnp.clip(band_t.reshape(-1).astype(jnp.int32), 0, max(T - w_y, 0))

    itemsize = x.dtype.itemsize
    cost = pl.CostEstimate(
        flops=2 * B * n_y * F * TW,
        transcendentals=0,
        bytes_accessed=itemsize * B * (n_x * w_x * T + 2 * n_y * F * TW),
    )

    grid_spec = pltpu.PrefetchScalarGridSpec(
        num_scalar_prefetch=2,
        grid=(B,),
        in_specs=[pl.BlockSpec(memory_space=pl.ANY)],   # x stays in HBM
        out_specs=pl.BlockSpec(memory_space=pl.ANY),    # aliased to x
        scratch_shapes=[
            pltpu.VMEM((max(w_x, 1), T), x.dtype),      # zeros_f
            pltpu.VMEM((F, TW), x.dtype),               # twin
            pltpu.SemaphoreType.DMA((max(n_x, 1),)),    # freq-band sems
            pltpu.SemaphoreType.DMA((2,)),              # window read/write sems
        ],
    )

    kernel = functools.partial(
        _spec_augment_kernel,
        n_x=n_x, w_x=w_x, n_y=n_y, w_y=w_y, T=T, TW=TW, aligned=aligned)

    return pl.pallas_call(
        kernel,
        out_shape=jax.ShapeDtypeStruct((B, F, T), x.dtype),
        grid_spec=grid_spec,
        # x is operand index 2 (after the two scalar-prefetch band tables).
        input_output_aliases={2: 0},
        compiler_params=pltpu.CompilerParams(
            dimension_semantics=("parallel",)),
        cost_estimate=cost,
    )(band_f, band_t, x)


def _draw_starts(key, batch, n_regions, high):
    """Reproduce `int(random.uniform(0, high))` draws, deterministically."""
    # TODO(synk): PyTorch uses Python's stdlib `random` stream (host-side); we
    # substitute jax.random, so the exact draws differ from torch.
    u = jax.random.uniform(key, (batch, n_regions), minval=0.0,
                           maxval=float(high))
    return jnp.floor(u).astype(jnp.int32)


def reference(x, band_f, band_t):
    """Pure-JAX reference matching the PyTorch SpecAugment semantics."""
    B, F, T = x.shape
    f_idx = jnp.arange(F)[None, :, None]
    t_idx = jnp.arange(T)[None, None, :]
    mask = jnp.zeros((B, F, T), dtype=bool)
    for r in range(CUTOUT_X_REGIONS):
        fs = band_f[:, r][:, None, None]
        mask |= (f_idx >= fs) & (f_idx < fs + CUTOUT_X_WIDTH)
    for r in range(CUTOUT_Y_REGIONS):
        ts = band_t[:, r][:, None, None]
        mask |= (t_idx >= ts) & (t_idx < ts + CUTOUT_Y_WIDTH)
    return jnp.where(mask, 0.0, x)


if __name__ == "__main__":
    B, F, T = 2, 16, 128  # small spectrogram: batch=2, 16 freq bins, 128 frames

    key = jax.random.PRNGKey(0)
    k_x, k_bf, k_bt = jax.random.split(key, 3)

    x = jax.random.normal(k_x, (B, F, T), dtype=jnp.float32)
    band_f = _draw_starts(k_bf, B, CUTOUT_X_REGIONS, F - CUTOUT_X_WIDTH)
    band_t = _draw_starts(k_bt, B, CUTOUT_Y_REGIONS, T - CUTOUT_Y_WIDTH)

    # Compute the reference BEFORE the kernel call: x is donated to (and
    # updated in place by) spec_augment and must not be read afterwards.
    ref = reference(x, band_f, band_t)

    out = jax.block_until_ready(spec_augment(x, band_f, band_t))

    assert out.shape == ref.shape and out.dtype == ref.dtype
    assert jnp.allclose(out, ref), "Pallas output mismatch vs reference"

    print("KERNEL_OK")
</pallas_src>

<mosaic_0001>
module attributes {stable_mosaic.version = 11 : i64} {
  func.func @_spec_augment_kernel(%arg0: i32, %arg1: memref<2xi32, #tpu.memory_space<smem>>, %arg2: memref<2xi32, #tpu.memory_space<smem>>, %arg3: memref<2x16x128xf32, #tpu.memory_space<any>>, %arg4: memref<2x16x128xf32, #tpu.memory_space<any>>, %arg5: memref<2x128xf32, #tpu.memory_space<vmem>>, %arg6: memref<16x128xf32, #tpu.memory_space<vmem>>, %arg7: memref<1x!tpu.dma_semaphore, #tpu.memory_space<semaphore_mem>>, %arg8: memref<2x!tpu.dma_semaphore, #tpu.memory_space<semaphore_mem>>) attributes {dimension_semantics = [#tpu.dimension_semantics<parallel>], iteration_bounds = array<i64: 2>, scalar_prefetch = 2 : i64, scratch_operands = 4 : i64, tpu.core_type = #tpu.core_type<tc>, window_params = [{}, {}]} {
    %cst = arith.constant 0.000000e+00 : f32
    %0 = vector.broadcast %cst : f32 to vector<2x128xf32>
    %c0 = arith.constant 0 : index
    %c0_0 = arith.constant 0 : index
    %1 = vector.load %arg5[%c0, %c0_0] : memref<2x128xf32, #tpu.memory_space<vmem>>, vector<2x128xf32>
    tpu.vector_store %arg5[%c0, %c0_0], %0 {strides = array<i32>} : memref<2x128xf32, #tpu.memory_space<vmem>>, vector<2x128xf32>,
    %c1_i32 = arith.constant 1 : i32
    %2 = arith.muli %arg0, %c1_i32 : i32
    %c0_i32 = arith.constant 0 : i32
    %3 = arith.addi %2, %c0_i32 : i32
    %4 = arith.index_cast %3 : i32 to index
    %5 = memref.load %arg1[%4] : memref<2xi32, #tpu.memory_space<smem>>
    %c0_i32_1 = arith.constant 0 : i32
    %c0_i32_2 = arith.constant 0 : i32
    %6 = tpu.memref_slice %arg4[%arg0, %5, %c0_i32_2] : memref<2x16x128xf32, #tpu.memory_space<any>> -> memref<1x2x128xf32, #tpu.memory_space<any>>
    %7 = tpu.memref_squeeze %6 : memref<1x2x128xf32, #tpu.memory_space<any>> -> memref<2x128xf32, #tpu.memory_space<any>>
    %8 = tpu.memref_slice %arg7[%c0_i32_1] : memref<1x!tpu.dma_semaphore, #tpu.memory_space<semaphore_mem>> -> memref<1x!tpu.dma_semaphore, #tpu.memory_space<semaphore_mem>>
    %9 = tpu.memref_squeeze %8 : memref<1x!tpu.dma_semaphore, #tpu.memory_space<semaphore_mem>> -> memref<!tpu.dma_semaphore, #tpu.memory_space<semaphore_mem>>
    tpu.enqueue_dma source(%arg5 : memref<2x128xf32, #tpu.memory_space<vmem>>) target(%7 : memref<2x128xf32, #tpu.memory_space<any>>) target_semaphore(%9 : memref<!tpu.dma_semaphore, #tpu.memory_space<semaphore_mem>>)
    %10 = tpu.iota {dimensions = array<i32: 0>} : vector<16x1xi32>
    %cst_3 = arith.constant 1.000000e+00 : f32
    %11 = vector.broadcast %cst_3 : f32 to vector<16x1xf32>
    %c1_i32_4 = arith.constant 1 : i32
    %12 = arith.muli %arg0, %c1_i32_4 : i32
    %c0_i32_5 = arith.constant 0 : i32
    %13 = arith.addi %12, %c0_i32_5 : i32
    %14 = arith.index_cast %13 : i32 to index
    %15 = memref.load %arg1[%14] : memref<2xi32, #tpu.memory_space<smem>>
    %16 = vector.broadcast %15 : i32 to vector<16x1xi32>
    %17 = arith.cmpi sge, %10, %16 : vector<16x1xi32>
    %c2_i32 = arith.constant 2 : i32
    %18 = arith.addi %15, %c2_i32 : i32
    %19 = vector.broadcast %18 : i32 to vector<16x1xi32>
    %20 = arith.cmpi slt, %10, %19 : vector<16x1xi32>
    %21 = arith.andi %17, %20 : vector<16x1xi1>
    %22 = arith.extui %21 : vector<16x1xi1> to vector<16x1xi32>
    %23 = arith.sitofp %22 : vector<16x1xi32> to vector<16x1xf32>
    %cst_6 = arith.constant 1.000000e+00 : f32
    %24 = vector.broadcast %cst_6 : f32 to vector<16x1xf32>
    %25 = arith.subf %24, %23 : vector<16x1xf32>
    %26 = arith.mulf %11, %25 : vector<16x1xf32>
    %27 = tpu.iota {dimensions = array<i32: 1>} : vector<1x128xi32>
    %c1_i32_7 = arith.constant 1 : i32
    %28 = arith.muli %arg0, %c1_i32_7 : i32
    %c0_i32_8 = arith.constant 0 : i32
    %29 = arith.addi %28, %c0_i32_8 : i32
    %30 = arith.index_cast %29 : i32 to index
    %31 = memref.load %arg2[%30] : memref<2xi32, #tpu.memory_space<smem>>
    %c0_i32_9 = arith.constant 0 : i32
    %c0_i32_10 = arith.constant 0 : i32
    %c0_i32_11 = arith.constant 0 : i32
    %32 = tpu.memref_slice %arg3[%arg0, %c0_i32_10, %c0_i32_11] : memref<2x16x128xf32, #tpu.memory_space<any>> -> memref<1x16x128xf32, #tpu.memory_space<any>>
    %33 = tpu.memref_squeeze %32 : memref<1x16x128xf32, #tpu.memory_space<any>> -> memref<16x128xf32, #tpu.memory_space<any>>
    %34 = tpu.memref_slice %arg8[%c0_i32_9] : memref<2x!tpu.dma_semaphore, #tpu.memory_space<semaphore_mem>> -> memref<1x!tpu.dma_semaphore, #tpu.memory_space<semaphore_mem>>
    %35 = tpu.memref_squeeze %34 : memref<1x!tpu.dma_semaphore, #tpu.memory_space<semaphore_mem>> -> memref<!tpu.dma_semaphore, #tpu.memory_space<semaphore_mem>>
    tpu.enqueue_dma source(%33 : memref<16x128xf32, #tpu.memory_space<any>>) target(%arg6 : memref<16x128xf32, #tpu.memory_space<vmem>>) target_semaphore(%35 : memref<!tpu.dma_semaphore, #tpu.memory_space<semaphore_mem>>)
    %c0_i32_12 = arith.constant 0 : i32
    %c0_i32_13 = arith.constant 0 : i32
    %c0_i32_14 = arith.constant 0 : i32
    %36 = tpu.memref_slice %arg3[%arg0, %c0_i32_13, %c0_i32_14] : memref<2x16x128xf32, #tpu.memory_space<any>> -> memref<1x16x128xf32, #tpu.memory_space<any>>
    %37 = tpu.memref_squeeze %36 : memref<1x16x128xf32, #tpu.memory_space<any>> -> memref<16x128xf32, #tpu.memory_space<any>>
    %38 = tpu.memref_slice %arg8[%c0_i32_12] : memref<2x!tpu.dma_semaphore, #tpu.memory_space<semaphore_mem>> -> memref<1x!tpu.dma_semaphore, #tpu.memory_space<semaphore_mem>>
    %39 = tpu.memref_squeeze %38 : memref<1x!tpu.dma_semaphore, #tpu.memory_space<semaphore_mem>> -> memref<!tpu.dma_semaphore, #tpu.memory_space<semaphore_mem>>
    tpu.wait_dma2 semaphore(%39 : memref<!tpu.dma_semaphore, #tpu.memory_space<semaphore_mem>>) src(%37 : memref<16x128xf32, #tpu.memory_space<any>>) dst(%arg6 : memref<16x128xf32, #tpu.memory_space<vmem>>)
    %c0_i32_15 = arith.constant 0 : i32
    %40 = vector.broadcast %c0_i32_15 : i32 to vector<1x128xi32>
    %41 = arith.addi %27, %40 : vector<1x128xi32>
    %42 = vector.broadcast %31 : i32 to vector<1x128xi32>
    %43 = arith.cmpi sge, %41, %42 : vector<1x128xi32>
    %c8_i32 = arith.constant 8 : i32
    %44 = arith.addi %31, %c8_i32 : i32
    %45 = vector.broadcast %44 : i32 to vector<1x128xi32>
    %46 = arith.cmpi slt, %41, %45 : vector<1x128xi32>
    %47 = arith.andi %43, %46 : vector<1x128xi1>
    %48 = arith.extui %47 : vector<1x128xi1> to vector<1x128xi32>
    %49 = arith.sitofp %48 : vector<1x128xi32> to vector<1x128xf32>
    %cst_16 = arith.constant 1.000000e+00 : f32
    %50 = vector.broadcast %cst_16 : f32 to vector<1x128xf32>
    %51 = arith.subf %50, %49 : vector<1x128xf32>
    %c0_17 = arith.constant 0 : index
    %c0_18 = arith.constant 0 : index
    %52 = vector.load %arg6[%c0_17, %c0_18] : memref<16x128xf32, #tpu.memory_space<vmem>>, vector<16x128xf32>
    %53 = vector.broadcast %51 : vector<1x128xf32> to vector<16x128xf32>
    %54 = arith.mulf %52, %53 : vector<16x128xf32>
    %55 = vector.broadcast %26 : vector<16x1xf32> to vector<16x128xf32>
    %56 = arith.mulf %54, %55 : vector<16x128xf32>
    %c0_19 = arith.constant 0 : index
    %c0_20 = arith.constant 0 : index
    %57 = vector.load %arg6[%c0_19, %c0_20] : memref<16x128xf32, #tpu.memory_space<vmem>>, vector<16x128xf32>
    tpu.vector_store %arg6[%c0_19, %c0_20], %56 {strides = array<i32>} : memref<16x128xf32, #tpu.memory_space<vmem>>, vector<16x128xf32>,
    %c1_i32_21 = arith.constant 1 : i32
    %c0_i32_22 = arith.constant 0 : i32
    %c0_i32_23 = arith.constant 0 : i32
    %58 = tpu.memref_slice %arg4[%arg0, %c0_i32_22, %c0_i32_23] : memref<2x16x128xf32, #tpu.memory_space<any>> -> memref<1x16x128xf32, #tpu.memory_space<any>>
    %59 = tpu.memref_squeeze %58 : memref<1x16x128xf32, #tpu.memory_space<any>> -> memref<16x128xf32, #tpu.memory_space<any>>
    %60 = tpu.memref_slice %arg8[%c1_i32_21] : memref<2x!tpu.dma_semaphore, #tpu.memory_space<semaphore_mem>> -> memref<1x!tpu.dma_semaphore, #tpu.memory_space<semaphore_mem>>
    %61 = tpu.memref_squeeze %60 : memref<1x!tpu.dma_semaphore, #tpu.memory_space<semaphore_mem>> -> memref<!tpu.dma_semaphore, #tpu.memory_space<semaphore_mem>>
    tpu.enqueue_dma source(%arg6 : memref<16x128xf32, #tpu.memory_space<vmem>>) target(%59 : memref<16x128xf32, #tpu.memory_space<any>>) target_semaphore(%61 : memref<!tpu.dma_semaphore, #tpu.memory_space<semaphore_mem>>)
    %c1_i32_24 = arith.constant 1 : i32
    %c0_i32_25 = arith.constant 0 : i32
    %c0_i32_26 = arith.constant 0 : i32
    %62 = tpu.memref_slice %arg4[%arg0, %c0_i32_25, %c0_i32_26] : memref<2x16x128xf32, #tpu.memory_space<any>> -> memref<1x16x128xf32, #tpu.memory_space<any>>
    %63 = tpu.memref_squeeze %62 : memref<1x16x128xf32, #tpu.memory_space<any>> -> memref<16x128xf32, #tpu.memory_space<any>>
    %64 = tpu.memref_slice %arg8[%c1_i32_24] : memref<2x!tpu.dma_semaphore, #tpu.memory_space<semaphore_mem>> -> memref<1x!tpu.dma_semaphore, #tpu.memory_space<semaphore_mem>>
    %65 = tpu.memref_squeeze %64 : memref<1x!tpu.dma_semaphore, #tpu.memory_space<semaphore_mem>> -> memref<!tpu.dma_semaphore, #tpu.memory_space<semaphore_mem>>
    tpu.wait_dma2 semaphore(%65 : memref<!tpu.dma_semaphore, #tpu.memory_space<semaphore_mem>>) src(%arg6 : memref<16x128xf32, #tpu.memory_space<vmem>>) dst(%63 : memref<16x128xf32, #tpu.memory_space<any>>)
    %c0_i32_27 = arith.constant 0 : i32
    %c0_i32_28 = arith.constant 0 : i32
    %66 = tpu.memref_slice %arg4[%arg0, %5, %c0_i32_28] : memref<2x16x128xf32, #tpu.memory_space<any>> -> memref<1x2x128xf32, #tpu.memory_space<any>>
    %67 = tpu.memref_squeeze %66 : memref<1x2x128xf32, #tpu.memory_space<any>> -> memref<2x128xf32, #tpu.memory_space<any>>
    %68 = tpu.memref_slice %arg7[%c0_i32_27] : memref<1x!tpu.dma_semaphore, #tpu.memory_space<semaphore_mem>> -> memref<1x!tpu.dma_semaphore, #tpu.memory_space<semaphore_mem>>
    %69 = tpu.memref_squeeze %68 : memref<1x!tpu.dma_semaphore, #tpu.memory_space<semaphore_mem>> -> memref<!tpu.dma_semaphore, #tpu.memory_space<semaphore_mem>>
    tpu.wait_dma2 semaphore(%69 : memref<!tpu.dma_semaphore, #tpu.memory_space<semaphore_mem>>) src(%arg5 : memref<2x128xf32, #tpu.memory_space<vmem>>) dst(%67 : memref<2x128xf32, #tpu.memory_space<any>>)
    return
  }
}

</mosaic_0001>

<bundles_post_ra>
// kernel: spec_augment.1
= control target key start
LH: loop header
LB: loop body
LE: loop exit
PB: predicated region body
PF: predicated region fallthrough
CT: control target
= control target key end

     0   :  { %s413_s0 = inlined_call_operand.vmem [shape: s32[2], index: 0, kind: input, shape index: {}]   ;;  %s414_s2 = inlined_call_operand.hbm [shape: f32[2,16,128], index: 2, kind: input, shape index: {}, may-alias: {2,3}]   ;;  %s415_s3 = inlined_call_operand.hbm [shape: f32[2,16,128], index: 3, kind: output, shape index: {}, may-alias: {2,3}]   ;;  %s416_s1 = inlined_call_operand.vmem [shape: s32[2], index: 1, kind: input, shape index: {}]  }
   0x1   :  { %s8_s14 = sshll.u32 %s413_s0, 4  ;;  %s12_s17 = sshll.u32 %s416_s1, 4  ;;  %s9_s14 = int_to_ptr.vmem [resolvable:$true] %s8_s14  ;;  %s13_s17 = int_to_ptr.vmem [resolvable:$true] %s12_s17 }
   0x2   :  { %s173_s18 = scalar_lea.vmem %s9_s14, 16  ;;  %p178_p1 = scmp.lt.s32.totalorder %s9_s14, %s9_s14 }
   0x3   :  { %p174_p0 = scmp.ne.s32.totalorder %s9_s14, %s173_s18  ;;  %p179_p2 = scmp.lt.s32.totalorder %s173_s18, %s173_s18 }
   0x5   :  { %p180_p3 = por %p179_p2, %p178_p1 }
   0x7   :  { %p181_p4 = pnand %p180_p3, %p174_p0 }
   0x9   :  { %184 = shalt.err (!%p181_p4)  }
   0xa   :  { %s285_s19 = smov [#allocation7]   ;;  %s185_s20 = scalar_lea.vmem %s13_s17, 16 }
   0xb   :  { %11 = dma.vmem_to_smem %s9_s14, 16, %s285_s19, [#allocation6] }
   0xc   :  { %p186_p5 = scmp.ne.s32.totalorder %s13_s17, %s185_s20  ;;  %p190_p6 = scmp.lt.s32.totalorder %s13_s17, %s13_s17 }
   0xd   :  { %p191_p7 = scmp.lt.s32.totalorder %s185_s20, %s185_s20 }
   0xf   :  { %p192_p8 = por %p191_p7, %p190_p6 }
  0x11   :  { %p193_p9 = pnand %p192_p8, %p186_p5 }
  0x13   :  { %196 = shalt.err (!%p193_p9)  }
  0x14   :  { %s286_s0 = smov [#allocation8]  }
  0x15   :  { %15 = dma.vmem_to_smem %s13_s17, 16, %s286_s0, [#allocation6] }
  0x16   :  { %273 = dma.done.wait [#allocation6], 32 }
  0x17   :  { %274 = vsyncadd [#allocation6], 4294967264 }
  0x18   :  { %17 = sfence }
  0x19   :  { %s316_s1 = smov 0  }
  0x1a LB: > { %v42_v0 = vlaneseq  ;;  %v287_v1 = vmov 0.0   ;;  %s45_s21 = sld [smem:[#allocation7 + %s283_s1]]  ;;  %s288_s24 = smov [#allocation2]   ;;  %s283_s1 = sphi %s316_s1, %s23_s1  }
  0x1b   : > { %25 = vst [vmem:[#allocation2] sm:$0x3] %v287_v1  ;;  %s326_s22 = sld [smem:[#allocation8 + %s283_s1]]  ;;  %s38_s25 = sshll.u32 %s288_s24, 4  ;;  %s331_s25 = int_to_ptr.vmem [resolvable:$true] %s38_s25 }
  0x1c   : > { %v43_v2 = vshrl.u32 %v42_v0, 7  ;;  %v323_v3 = vand.u32 127, %v42_v0  ;;  %s26_s23 = sld [smem:[#allocation7 + %s283_s1]]  ;;  %s148_s26 = sshll.u32 %s283_s1, 4 }
  0x1d   : > { %s158_s27 = sshll.u32 %s283_s1, 8  ;;  %s289_s28 = smov [#allocation3]  }
  0x1e   : > { %v44_v4 = vadd.s32 8, %v43_v2  ;;  %s73_s29 = sshll.u32 %s289_s28, 4  ;;  %s338_s7 = scalar_lea.hbm %s414_s2, %s158_s27  ;;  %s340_s29 = int_to_ptr.vmem [resolvable:$true] %s73_s29 }
  0x1f   : > { %s197_s12 = scalar_lea.vmem %s331_s25, 32  ;;  %p202_p11 = scmp.lt.s32.totalorder %s331_s25, %s331_s25 }
  0x20   : > { %v46_v5 = vstv %s45_s21  ;;  %s49_s30 = sadd.s32 2, %s45_s21  ;;  %p198_p10 = scmp.ne.s32.totalorder %s331_s25, %s197_s12 }
  0x21   : > { %vm47_vm0 = vcmp.ge.s32.totalorder %v43_v2, %v46_v5  ;;  %vm48_vm1 = vcmp.ge.s32.totalorder %v44_v4, %v46_v5  ;;  %v50_v6 = vstv %s49_s30  ;;  %p203_p12 = scmp.lt.s32.totalorder %s197_s12, %s197_s12 }
  0x22   : > { %s28_s4 = sadd.s32 %s148_s26, %s26_s23  ;;  %vm51_vm2 = vcmp.lt.s32.totalorder %v43_v2, %v50_v6  ;;  %vm52_vm3 = vcmp.lt.s32.totalorder %v44_v4, %v50_v6 }
  0x23   : > { %s149_s8 = sshll.u32 %s28_s4, 4  ;;  %vm53_vm4 = vmand %vm47_vm0, %vm51_vm2  ;;  %p204_p13 = por %p203_p12, %p202_p11 }
  0x24   : > { %s30_s11 = scalar_lea.hbm %s415_s3, %s149_s8  ;;  %vm345_vm5 = vmand %vm48_vm1, %vm52_vm3  ;;  %v150_v8 = vsel %vm53_vm4, 1.0, %v287_v1 }
  0x25   : > { %p205_p0 = pnand %p204_p13, %p198_p10 }
  0x27   : > { %208 = shalt.err (!%p205_p0)  }
  0x28   : > { %s209_s13 = scalar_lea.hbm %s30_s11, 32  ;;  %s211_s16 = scalar_lea.hbm %s415_s3, 512 }
  0x29   : > { %p210_p1 = scmp.ne.s32.totalorder %s30_s11, %s209_s13  ;;  %p212_p2 = scmp.lt.u32.totalorder %s30_s11, %s415_s3 }
  0x2a   : > { %p213_p3 = scmp.lt.u32.totalorder %s211_s16, %s209_s13  ;;  %p215_p5 = scmp.lt.u32.totalorder %s209_s13, %s30_s11 }
  0x2c   : > { %p214_p4 = por %p213_p3, %p212_p2 }
  0x2e   : > { %p216_p6 = por %p215_p5, %p214_p4 }
  0x30   : > { %p217_p7 = pnand %p216_p6, %p210_p1 }
  0x32   : > { %220 = shalt.err (!%p217_p7)  }
  0x33   : > { %41 = dma.vmem_to_hbm [thread:$0]  %s331_s25, 32, %s30_s11, [#allocation4]  ;;  %v151_v9 = vsel %vm345_vm5, 1.0, %v287_v1  ;;  %v59_v10 = vsub.f32 1.0, %v150_v8 }
  0x34   : > { %s221_s0 = scalar_lea.hbm %s338_s7, 256  ;;  %s223_s24 = scalar_lea.hbm %s414_s2, 512 }
  0x35   : > { %p222_p8 = scmp.ne.s32.totalorder %s338_s7, %s221_s0  ;;  %p224_p9 = scmp.lt.u32.totalorder %s338_s7, %s414_s2 }
  0x36   : > { %p225_p10 = scmp.lt.u32.totalorder %s223_s24, %s221_s0  ;;  %p227_p12 = scmp.lt.u32.totalorder %s221_s0, %s338_s7 }
  0x38   : > { %p226_p11 = por %p225_p10, %p224_p9 }
  0x3a   : > { %p228_p13 = por %p227_p12, %p226_p11 }
  0x3c   : > { %p229_p0 = pnand %p228_p13, %p222_p8 }
  0x3e   : > { %232 = shalt.err (!%p229_p0)  }
  0x3f   : > { %s233_s25 = scalar_lea.vmem %s340_s29, 256  ;;  %p238_p2 = scmp.lt.s32.totalorder %s340_s29, %s340_s29 }
  0x40   : > { %p234_p1 = scmp.ne.s32.totalorder %s340_s29, %s233_s25  ;;  %p239_p3 = scmp.lt.s32.totalorder %s233_s25, %s233_s25 }
  0x42   : > { %p240_p4 = por %p239_p3, %p238_p2 }
  0x44   : > { %p382_p5 = pnand %p240_p4, %p234_p1 }
  0x46   : > { %244 = shalt.err (!%p382_p5)  }
  0x47   : > { %76 = dma.hbm_to_vmem [thread:$0]  %s338_s7, 256, %s340_s29, [#allocation5]  ;;  %v60_v11 = vsub.f32 1.0, %v151_v9 }
  0x48   : > { %275 = dma.done.wait [#allocation5], 256 }
  0x49   : > { %276 = vsyncadd [#allocation5], 4294967040  ;;  %v80_v12 = vstv %s326_s22  ;;  %s82_s4 = sadd.s32 8, %s326_s22  ;;  %v89_v16 = vld [vmem:[#allocation3] sm:$0xff]  ;;  %v90_v17 = vld [vmem:[#allocation3 + $0x8] sm:$0xff]  ;;  %s98_s22 = scalar_lea.hbm %s415_s3, %s158_s27 }
  0x4a   : > { %vm81_vm6 = vcmp.ge.s32.totalorder %v323_v3, %v80_v12  ;;  %v83_v13 = vstv %s82_s4 }
  0x4b   : > { %vm84_vm7 = vcmp.lt.s32.totalorder %v323_v3, %v83_v13 }
  0x4c   : > { %vm85_vm8 = vmand %vm81_vm6, %vm84_vm7 }
  0x4d   : > { %v153_v14 = vsel %vm85_vm8, 1.0, %v287_v1 }
  0x4e   : > { %v88_v15 = vsub.f32 1.0, %v153_v14 }
  0x50   : > { %v91_v18 = vmul.f32 %v89_v16, %v88_v15  ;;  %v92_v19 = vmul.f32 %v90_v17, %v88_v15 }
  0x52   : > { %v93_v20 = vmul.f32 %v91_v18, %v59_v10  ;;  %v94_v21 = vmul.f32 %v92_v19, %v60_v11 }
  0x54   : > { %95 = vst [vmem:[#allocation3] sm:$0xff] %v93_v20  ;;  %96 = vst [vmem:[#allocation3 + $0x8] sm:$0xff] %v94_v21 }
  0x55   : > { %256 = shalt.err (!%p382_p5)  }
  0x56   : > { %s257_s7 = scalar_lea.hbm %s98_s22, 256  ;;  %p260_p7 = scmp.lt.u32.totalorder %s98_s22, %s415_s3 }
  0x57   : > { %p258_p6 = scmp.ne.s32.totalorder %s98_s22, %s257_s7  ;;  %p261_p8 = scmp.lt.u32.totalorder %s211_s16, %s257_s7 }
  0x58   : > { %p263_p10 = scmp.lt.u32.totalorder %s257_s7, %s98_s22 }
  0x59   : > { %p262_p9 = por %p261_p8, %p260_p7 }
  0x5b   : > { %p264_p11 = por %p263_p10, %p262_p9 }
  0x5d   : > { %p265_p12 = pnand %p264_p11, %p258_p6 }
  0x5f   : > { %268 = shalt.err (!%p265_p12)  }
  0x60   : > { %110 = dma.vmem_to_hbm [thread:$0]  %s340_s29, 256, %s98_s22, [#allocation5 + $0x1] }
  0x61   : > { %277 = dma.done.wait [#allocation5 + $0x1], 256 }
  0x62   : > { %278 = vsyncadd [#allocation5 + $0x1], 4294967040 }
  0x63   : > { %279 = dma.done.wait [#allocation4], 32 }
  0x64   : > { %280 = vsyncadd [#allocation4], 4294967264  ;;  %s23_s1 = sadd.s32 1, %s283_s1  }
  0x65   : > { %p20_p13 = scmp.ge.s32.totalorder %s23_s1, 2  }
  0x67   :  { %22 = sbr.rel (!%p20_p13) target bundleno = 26 (0x1a), region = 36 }
  0x6e   :  { %116 = vsyncmov [#allocation4] }
  0x71   :  { %s117_s27 = vpop.sfrf %116 }
  0x72   :  { %p155_p0 = scmp.ne.s32.totalorder %s117_s27, 0 }
  0x74   :  { %121 = shalt.err (%p155_p0)  }
  0x75   :  { %122 = vsyncmov [#allocation5] }
  0x78   :  { %s123_s12 = vpop.sfrf %122 }
  0x79   :  { %p156_p1 = scmp.ne.s32.totalorder %s123_s12, 0 }
  0x7b   :  { %127 = shalt.err (%p156_p1)  }
  0x7c   :  { %129 = vsyncmov [#allocation5 + $0x1] }
  0x7f   :  { %s130_s29 = vpop.sfrf %129 }
  0x80   :  { %p157_p2 = scmp.ne.s32.totalorder %s130_s29, 0 }
  0x82   :  { %134 = shalt.err (%p157_p2)  }

</bundles_post_ra>
